<compile_context>
chip_gen: v7x
topology: tpu7x:2x2x1
jax: 0.10.0
libtpu: 0.0.40
codegen_flags: <defaults>
</compile_context>

<pallas_src>
import functools
from typing import NamedTuple

import jax
import jax.numpy as jnp
from jax.experimental import pallas as pl
from jax.experimental.pallas import tpu as pltpu


LANE = 128      # TPU lane width: output class/feature dims padded to this
SUBLANE = 8     # sublane alignment for the folded (batch*seq) axis


def _round_up(x, m):
    return (x + m - 1) // m * m


def _cdiv(a, b):
    return (a + b - 1) // b


def _vmem_capacity_bytes():
    """Chip-aware VMEM capacity (falls back to a conservative v7x-sized value)."""
    try:
        info = pltpu.get_tpu_info()
        cap = int(getattr(info, "vmem_capacity_bytes", 0) or 0)
        if cap > 0:
            return cap
    except Exception:
        pass
    return 64 * 1024 * 1024


def _softmax_fuse_limit():
    """Max padded class width for which the eval softmax is fused in-kernel."""
    return 1024 if _vmem_capacity_bytes() >= 100 * 1024 * 1024 else 512


# ----------------------------- Pallas kernels --------------------------------

def _gemm_add_kernel(act_ref, w_ref, add_ref, o_ref, *, compute_dtype):
    # act_ref: (tm, C) f32 (cast to bf16 here, not in the wrapper)
    # w_ref:   (C, tn) bf16     add_ref: (1|tm, tn) bf16     o_ref: (tm, tn)
    a = act_ref[...].astype(compute_dtype)
    acc = jnp.dot(a, w_ref[...], preferred_element_type=jnp.float32)
    acc = acc + add_ref[...].astype(jnp.float32)
    o_ref[...] = acc.astype(o_ref.dtype)


def _gemm_add_softmax_kernel(act_ref, w_ref, add_ref, o_ref, *, compute_dtype):
    # Eval-only variant: full class width in one tile; softmax fused in the
    # epilogue (exp / reciprocal ride the EUP slot, idle in this mem-bound kernel).
    a = act_ref[...].astype(compute_dtype)
    logits = jnp.dot(a, w_ref[...], preferred_element_type=jnp.float32)
    logits = logits + add_ref[...].astype(jnp.float32)
    m = jnp.max(logits, axis=-1, keepdims=True)
    p = jnp.exp(logits - m)
    denom = jnp.sum(p, axis=-1, keepdims=True)
    o_ref[...] = (p * pl.reciprocal(denom, approx=True)).astype(o_ref.dtype)


# ----------------------------- tiling policy ---------------------------------

def _choose_tiles(M, C, N, unit, out_itemsize, act_itemsize, w_itemsize,
                  force_full_n):
    vmem = _vmem_capacity_bytes()
    big_vmem = vmem >= 100 * 1024 * 1024          # v5e / v6e (128 MiB) vs v7x (64 MiB)
    cap = 1024 if big_vmem else 512

    tn = N if (force_full_n or N <= cap) else (cap // LANE) * LANE

    units_total = _cdiv(M, unit)                  # unit = add-table period (>= 8)
    k = min(max(1, cap // unit), units_total)

    def ws_bytes(k_, tn_):                        # double-buffered working set
        tm_ = k_ * unit
        return 2 * (tm_ * C * act_itemsize        # f32 activation tile
                    + C * tn_ * w_itemsize        # bf16 weight tile
                    + tm_ * tn_ * w_itemsize      # add tile (worst case)
                    + tm_ * tn_ * out_itemsize)   # output tile

    budget = vmem // 4                            # leave headroom for Mosaic scratch
    while k > 1 and ws_bytes(k, tn) > budget:
        k = max(1, k // 2)
    while (not force_full_n) and tn > LANE and ws_bytes(k, tn) > budget:
        tn = max(LANE, (tn // 2 // LANE) * LANE)

    # v7x megacore: keep >= 2 blocks on a parallel axis whenever possible.
    if units_total >= 2 and _cdiv(M, k * unit) == 1 and _cdiv(N, tn) == 1:
        k = max(1, units_total // 2)

    tm = k * unit
    vmem_limit = int(min(vmem // 2, 64 * 1024 * 1024))
    return tm, tn, vmem_limit


# ----------------------------- GEMM driver ------------------------------------

def _head_gemm(act, w, add, *, add_period, out_dtype, softmax=False,
               compute_dtype=jnp.bfloat16):
    """out = act @ w + add (row-periodic), optionally row-softmaxed.

    act: (M, C) float32 — cast to `compute_dtype` inside the kernel.
    w:   (C, N) compute_dtype, N % 128 == 0.
    add: (R, N) compute_dtype; R == 1 (per-column bias) or a sublane-aligned
         row period (positional embedding) — the M tile is a multiple of R.
    """
    M, C = act.shape
    N = w.shape[1]
    assert w.shape[0] == C and N % LANE == 0
    R = add.shape[0]
    assert R == add_period and add.shape[1] == N
    assert R == 1 or R % SUBLANE == 0

    unit = R if R > 1 else SUBLANE
    tm, tn, vmem_limit = _choose_tiles(
        M, C, N, unit,
        out_itemsize=jnp.dtype(out_dtype).itemsize,
        act_itemsize=act.dtype.itemsize,
        w_itemsize=jnp.dtype(compute_dtype).itemsize,
        force_full_n=softmax)

    num_mi = _cdiv(M, tm)
    num_nj = _cdiv(N, tn)
    M_pad = num_mi * tm
    if M_pad != M:
        act = jnp.pad(act, ((0, M_pad - M), (0, 0)))

    # Pre-tile the periodic add table to one M tile so its block index is
    # constant across M tiles (never re-streamed per batch element / M tile).
    if R > 1:
        add_tile = jnp.tile(add, (tm // R, 1))
        add_rows = tm
    else:
        add_tile = add
        add_rows = 1

    kernel = _gemm_add_softmax_kernel if softmax else _gemm_add_kernel
    kernel = functools.partial(kernel, compute_dtype=compute_dtype)

    cost = pl.CostEstimate(
        flops=2 * M_pad * C * N,
        transcendentals=M_pad * N if softmax else 0,
        bytes_accessed=(M_pad * C * act.dtype.itemsize
                        + C * N * jnp.dtype(compute_dtype).itemsize
                        + add_tile.size * add_tile.dtype.itemsize
                        + M_pad * N * jnp.dtype(out_dtype).itemsize),
    )

    out = pl.pallas_call(
        kernel,
        out_shape=jax.ShapeDtypeStruct((M_pad, N), out_dtype),
        grid=(num_mi, num_nj),
        in_specs=[
            # activation tile: constant across the inner N axis (one fetch / M tile)
            pl.BlockSpec((tm, C), lambda mi, nj: (mi, 0)),
            # weight tile: depends only on the N tile
            pl.BlockSpec((C, tn), lambda mi, nj: (0, nj)),
            # bias / pre-tiled pos table: constant across all M tiles
            pl.BlockSpec((add_rows, tn), lambda mi, nj: (0, nj)),
        ],
        out_specs=pl.BlockSpec((tm, tn), lambda mi, nj: (mi, nj)),
        compiler_params=pltpu.CompilerParams(
            dimension_semantics=("parallel", "parallel"),
            vmem_limit_bytes=vmem_limit),
        cost_estimate=cost,
    )(act, w, add_tile)

    return out[:M] if M_pad != M else out


# ----------------------------- parameters -------------------------------------

class MultiHeadDims(NamedTuple):
    in_channels: int
    n_ctc: int
    n_ctc_pad: int
    n_nrtr: int
    n_nrtr_pad: int
    pos_max_len: int


def init_multihead_params(key, in_channels, ctc_classes, nrtr_dim, pos_max_len):
    """Synthetic params mirroring the PyTorch module (nn.Linear weights stored
    transposed as (in, out) so kernels compute act @ W directly)."""
    k_ctc, k_fc, k_pos = jax.random.split(key, 3)
    return {
        # CTCHead: Linear(in_channels, ctc_classes) with bias
        "ctc_w": 0.02 * jax.random.normal(k_ctc, (in_channels, ctc_classes), jnp.float32),
        "ctc_b": jnp.zeros((ctc_classes,), jnp.float32),
        # FCTranspose: Linear(in_channels, nrtr_dim, bias=False)
        "fc_w": 0.02 * jax.random.normal(k_fc, (in_channels, nrtr_dim), jnp.float32),
        # AddPos: Parameter(1, pos_max_len, nrtr_dim), trunc_normal_(std=1, a=-2, b=2)
        "pos": jax.random.truncated_normal(
            k_pos, -2.0, 2.0, (1, pos_max_len, nrtr_dim), jnp.float32),
    }


def pack_multihead_params(params, compute_dtype=jnp.bfloat16):
    """One-time packing (call OUTSIDE jit): split, 128-lane padded, bf16 weights
    and add tables; eval bias carries -1e9 in the padded class columns so the
    fused in-kernel softmax normalizes over real classes only."""
    ctc_w, ctc_b, fc_w, pos = params["ctc_w"], params["ctc_b"], params["fc_w"], params["pos"]
    C, n_ctc = ctc_w.shape
    n_nrtr = fc_w.shape[1]
    pos_max_len = pos.shape[1]
    n_ctc_pad = _round_up(n_ctc, LANE)
    n_nrtr_pad = _round_up(n_nrtr, LANE)

    w_ctc = jnp.zeros((C, n_ctc_pad), compute_dtype)
    w_ctc = w_ctc.at[:, :n_ctc].set(ctc_w.astype(compute_dtype))
    w_nrtr = jnp.zeros((C, n_nrtr_pad), compute_dtype)
    w_nrtr = w_nrtr.at[:, :n_nrtr].set(fc_w.astype(compute_dtype))

    bias = jnp.zeros((1, n_ctc_pad), compute_dtype)
    bias = bias.at[0, :n_ctc].set(ctc_b.astype(compute_dtype))
    bias_eval = jnp.full((1, n_ctc_pad), -1e9, compute_dtype)
    bias_eval = bias_eval.at[0, :n_ctc].set(ctc_b.astype(compute_dtype))

    pos_pad = jnp.zeros((pos_max_len, n_nrtr_pad), compute_dtype)
    pos_pad = pos_pad.at[:, :n_nrtr].set(pos[0].astype(compute_dtype))

    dims = MultiHeadDims(C, n_ctc, n_ctc_pad, n_nrtr, n_nrtr_pad, pos_max_len)
    return {"w_ctc": w_ctc, "w_nrtr": w_nrtr, "bias": bias,
            "bias_eval": bias_eval, "pos": pos_pad}, dims


# ----------------------------- forward -----------------------------------------

def multihead_forward(x, packed, dims: MultiHeadDims, training=True, use_pos=True,
                      compute_dtype=jnp.bfloat16, gtc_dtype=jnp.bfloat16):
    """MultiHead forward (CTC branch + NRTR before_gtc branch).

    x: (B, C, H, W) float32, NCHW.
    train: {'ctc_neck', 'ctc': {'predict'}, 'gtc'}   eval: {'predict'} (softmaxed)
    The gtc half (an intermediate activation feeding the NRTR transformer) is
    stored in bf16 by default to halve its HBM write; pass gtc_dtype=jnp.float32
    for full precision.
    """
    B, C, H, W = x.shape
    assert C == dims.in_channels
    # SequenceEncoder 'reshape' neck (Im2Seq) requires H == 1.
    assert H == 1, "Im2Seq ('reshape' CTC neck) expects feature-map height == 1"
    S = H * W
    assert S <= dims.pos_max_len, (
        f"sequence length {S} exceeds AddPos max width {dims.pos_max_len}")
    # TODO(synk): use_pool (AvgPool2d) and the 'svtr' SequenceEncoder neck variant are
    # not implemented; only the default 'reshape' (Im2Seq) neck path is covered.

    S_pad = _round_up(S, SUBLANE)      # sublane-align the folded sequence axis
    M = B * S_pad

    def fold(seq_f32):                 # (B, S, C) f32 -> (B*S_pad, C) f32
        if S_pad != S:
            seq_f32 = jnp.pad(seq_f32, ((0, 0), (0, S_pad - S), (0, 0)))
        return seq_f32.reshape(M, C)

    if training:
        # ctc_neck (Im2Seq output) is a required module output; the kernel reuses
        # it directly (f32 in HBM, cast to bf16 inside the kernel).
        ctc_neck = jnp.transpose(x.reshape(B, C, S), (0, 2, 1))     # (B, S, C) f32
        act = fold(ctc_neck)                                         # (M, C) f32

        ctc_flat = _head_gemm(act, packed["w_ctc"], packed["bias"],
                              add_period=1, out_dtype=jnp.float32,
                              compute_dtype=compute_dtype)           # (M, n_ctc_pad) f32

        if use_pos:
            pos = packed["pos"][:S]
            if S_pad != S:
                pos = jnp.pad(pos, ((0, S_pad - S), (0, 0)))
            gtc_flat = _head_gemm(act, packed["w_nrtr"], pos,
                                  add_period=S_pad, out_dtype=gtc_dtype,
                                  compute_dtype=compute_dtype)        # (M, n_nrtr_pad)
        else:
            zero_add = jnp.zeros((1, dims.n_nrtr_pad), compute_dtype)
            gtc_flat = _head_gemm(act, packed["w_nrtr"], zero_add,
                                  add_period=1, out_dtype=gtc_dtype,
                                  compute_dtype=compute_dtype)

        ctc_logits = ctc_flat.reshape(B, S_pad, dims.n_ctc_pad)[:, :S, :dims.n_ctc]
        gtc = gtc_flat.reshape(B, S_pad, dims.n_nrtr_pad)[:, :S, :dims.n_nrtr]
        # TODO(synk): NRTRTransformer / SARHead are not part of the provided source; 'gtc'
        # carries the before_gtc (Flatten -> FCTranspose -> AddPos) output that feeds them.
        return {"ctc_neck": ctc_neck,
                "ctc": {"predict": ctc_logits},
                "gtc": gtc}

    # Eval: only the CTC branch is returned; CTCHead applies softmax at eval time.
    seq = jnp.transpose(x.reshape(B, C, S), (0, 2, 1))
    act = fold(seq)
    if dims.n_ctc_pad <= _softmax_fuse_limit():
        probs_flat = _head_gemm(act, packed["w_ctc"], packed["bias_eval"],
                                add_period=1, out_dtype=jnp.float32,
                                softmax=True, compute_dtype=compute_dtype)
        probs = probs_flat.reshape(B, S_pad, dims.n_ctc_pad)[:, :S, :dims.n_ctc]
        return {"predict": probs}
    # Wide-vocab fallback: plain GEMM, softmax outside the kernel.
    logits_flat = _head_gemm(act, packed["w_ctc"], packed["bias"],
                             add_period=1, out_dtype=jnp.float32,
                             compute_dtype=compute_dtype)
    logits = logits_flat.reshape(B, S_pad, dims.n_ctc_pad)[:, :S, :dims.n_ctc]
    return {"predict": jax.nn.softmax(logits, axis=-1)}


# ----------------------------- demo / test --------------------------------------

if __name__ == "__main__":
    # Small rec-model feature map: B=2, C=64, H=1, W=16.
    B, C, H, W = 2, 64, 1, 16
    CTC_CLASSES = 40          # out_channels_list['CTCLabelDecode']
    NRTR_DIM = 64             # head_list NRTRHead nrtr_dim
    POS_MAX_LEN = 80          # AddPos max width

    key = jax.random.PRNGKey(0)
    k_x, k_p = jax.random.split(key)
    x = jax.random.normal(k_x, (B, C, H, W), jnp.float32)
    params = init_multihead_params(k_p, C, CTC_CLASSES, NRTR_DIM, POS_MAX_LEN)
    packed, dims = pack_multihead_params(params)      # one-time packing, outside jit

    train_fwd = jax.jit(functools.partial(multihead_forward, dims=dims, training=True))
    eval_fwd = jax.jit(functools.partial(multihead_forward, dims=dims, training=False))

    out = train_fwd(x, packed)
    out_eval = eval_fwd(x, packed)
    jax.block_until_ready((out, out_eval))

    S = H * W
    assert out["ctc"]["predict"].shape == (B, S, CTC_CLASSES)
    assert out["ctc_neck"].shape == (B, S, C)
    assert out["gtc"].shape == (B, S, NRTR_DIM)
    assert out_eval["predict"].shape == (B, S, CTC_CLASSES)

    # Reference (plain JAX) with identically bf16-rounded operands, f32 accumulation.
    seq = jnp.transpose(x.reshape(B, C, S), (0, 2, 1))
    seq_r = seq.astype(jnp.bfloat16).astype(jnp.float32)
    w_ctc_r = params["ctc_w"].astype(jnp.bfloat16).astype(jnp.float32)
    w_fc_r = params["fc_w"].astype(jnp.bfloat16).astype(jnp.float32)
    b_r = params["ctc_b"].astype(jnp.bfloat16).astype(jnp.float32)
    pos_r = params["pos"].astype(jnp.bfloat16).astype(jnp.float32)
    hi = jax.lax.Precision.HIGHEST
    ref_ctc = jnp.einsum("bsc,cn->bsn", seq_r, w_ctc_r, precision=hi) + b_r
    ref_gtc = jnp.einsum("bsc,cd->bsd", seq_r, w_fc_r, precision=hi) + pos_r[:, :S, :]

    assert jnp.allclose(out["ctc_neck"], seq, atol=1e-6)
    err_ctc = float(jnp.max(jnp.abs(out["ctc"]["predict"] - ref_ctc)))
    assert err_ctc < 1e-3, err_ctc
    err_gtc = float(jnp.max(jnp.abs(out["gtc"].astype(jnp.float32) - ref_gtc)))
    assert err_gtc < 3e-2, err_gtc          # gtc half is stored in bf16 by design
    ref_prob = jax.nn.softmax(ref_ctc, axis=-1)
    err_eval = float(jnp.max(jnp.abs(out_eval["predict"] - ref_prob)))
    assert err_eval < 1e-2, err_eval        # approx reciprocal in the fused softmax
    assert jnp.allclose(jnp.sum(out_eval["predict"], axis=-1), 1.0, atol=2e-2)

    print("KERNEL_OK")
</pallas_src>

<mosaic_0001>
module attributes {stable_mosaic.version = 11 : i64} {
  func.func @_gemm_add_kernel(%arg0: i32, %arg1: i32, %arg2: memref<16x64xf32, #tpu.memory_space<vmem>>, %arg3: memref<64x128xbf16, #tpu.memory_space<vmem>>, %arg4: memref<16x128xbf16, #tpu.memory_space<vmem>>, %arg5: memref<16x128xbf16, #tpu.memory_space<vmem>>) attributes {dimension_semantics = [#tpu.dimension_semantics<parallel>, #tpu.dimension_semantics<parallel>], iteration_bounds = array<i64: 2, 1>, scalar_prefetch = 0 : i64, scratch_operands = 0 : i64, tpu.core_type = #tpu.core_type<tc>, window_params = [{transform_indices = @transform_0, window_bounds = array<i64: 16, 64>}, {transform_indices = @transform_1, window_bounds = array<i64: 64, 128>}, {transform_indices = @transform_2, window_bounds = array<i64: 16, 128>}, {transform_indices = @transform_3, window_bounds = array<i64: 16, 128>}]} {
    %c0 = arith.constant 0 : index
    %c0_0 = arith.constant 0 : index
    %0 = vector.load %arg2[%c0, %c0_0] : memref<16x64xf32, #tpu.memory_space<vmem>>, vector<16x64xf32>
    %1 = arith.truncf %0 : vector<16x64xf32> to vector<16x64xbf16>
    %c0_1 = arith.constant 0 : index
    %c0_2 = arith.constant 0 : index
    %2 = vector.load %arg3[%c0_1, %c0_2] : memref<64x128xbf16, #tpu.memory_space<vmem>>, vector<64x128xbf16>
    %cst = arith.constant dense<0.000000e+00> : vector<16x128xf32>
    %3 = tpu.matmul %1, %2, %cst {dimension_numbers = #tpu.dot_dimension_numbers<[1], [0], [0], [1], [0, 0, 1, 1], [], []>} : vector<16x64xbf16>, vector<64x128xbf16>, vector<16x128xf32> -> vector<16x128xf32>
    %c0_3 = arith.constant 0 : index
    %c0_4 = arith.constant 0 : index
    %4 = vector.load %arg4[%c0_3, %c0_4] : memref<16x128xbf16, #tpu.memory_space<vmem>>, vector<16x128xbf16>
    %5 = arith.extf %4 : vector<16x128xbf16> to vector<16x128xf32>
    %6 = arith.addf %3, %5 : vector<16x128xf32>
    %7 = arith.truncf %6 : vector<16x128xf32> to vector<16x128xbf16>
    %c0_5 = arith.constant 0 : index
    %c0_6 = arith.constant 0 : index
    %8 = vector.load %arg5[%c0_5, %c0_6] : memref<16x128xbf16, #tpu.memory_space<vmem>>, vector<16x128xbf16>
    tpu.vector_store %arg5[%c0_5, %c0_6], %7 {strides = array<i32>} : memref<16x128xbf16, #tpu.memory_space<vmem>>, vector<16x128xbf16>,
    return
  }
  func.func @transform_0(%arg0: i32, %arg1: i32) -> (i32, i32) {
    %c0_i32 = arith.constant 0 : i32
    %c0_i32_0 = arith.constant 0 : i32
    return %arg0, %c0_i32 : i32, i32
  }
  func.func @transform_1(%arg0: i32, %arg1: i32) -> (i32, i32) {
    %c0_i32 = arith.constant 0 : i32
    %c0_i32_0 = arith.constant 0 : i32
    return %c0_i32, %arg1 : i32, i32
  }
  func.func @transform_2(%arg0: i32, %arg1: i32) -> (i32, i32) {
    %c0_i32 = arith.constant 0 : i32
    %c0_i32_0 = arith.constant 0 : i32
    return %c0_i32, %arg1 : i32, i32
  }
  func.func @transform_3(%arg0: i32, %arg1: i32) -> (i32, i32) {
    %c0_i32 = arith.constant 0 : i32
    return %arg0, %arg1 : i32, i32
  }
}

module attributes {stable_mosaic.version = 11 : i64} {
  func.func @_gemm_add_kernel(%arg0: i32, %arg1: i32, %arg2: memref<16x64xf32, #tpu.memory_space<vmem>>, %arg3: memref<64x128xbf16, #tpu.memory_space<vmem>>, %arg4: memref<1x128xbf16, #tpu.memory_space<vmem>>, %arg5: memref<16x128xf32, #tpu.memory_space<vmem>>) attributes {dimension_semantics = [#tpu.dimension_semantics<parallel>, #tpu.dimension_semantics<parallel>], iteration_bounds = array<i64: 2, 1>, scalar_prefetch = 0 : i64, scratch_operands = 0 : i64, tpu.core_type = #tpu.core_type<tc>, window_params = [{transform_indices = @transform_0, window_bounds = array<i64: 16, 64>}, {transform_indices = @transform_1, window_bounds = array<i64: 64, 128>}, {transform_indices = @transform_2, window_bounds = array<i64: 1, 128>}, {transform_indices = @transform_3, window_bounds = array<i64: 16, 128>}]} {
    %c0 = arith.constant 0 : index
    %c0_0 = arith.constant 0 : index
    %0 = vector.load %arg2[%c0, %c0_0] : memref<16x64xf32, #tpu.memory_space<vmem>>, vector<16x64xf32>
    %1 = arith.truncf %0 : vector<16x64xf32> to vector<16x64xbf16>
    %c0_1 = arith.constant 0 : index
    %c0_2 = arith.constant 0 : index
    %2 = vector.load %arg3[%c0_1, %c0_2] : memref<64x128xbf16, #tpu.memory_space<vmem>>, vector<64x128xbf16>
    %cst = arith.constant dense<0.000000e+00> : vector<16x128xf32>
    %3 = tpu.matmul %1, %2, %cst {dimension_numbers = #tpu.dot_dimension_numbers<[1], [0], [0], [1], [0, 0, 1, 1], [], []>} : vector<16x64xbf16>, vector<64x128xbf16>, vector<16x128xf32> -> vector<16x128xf32>
    %c0_3 = arith.constant 0 : index
    %c0_4 = arith.constant 0 : index
    %4 = vector.load %arg4[%c0_3, %c0_4] : memref<1x128xbf16, #tpu.memory_space<vmem>>, vector<1x128xbf16>
    %5 = arith.extf %4 : vector<1x128xbf16> to vector<1x128xf32>
    %6 = vector.broadcast %5 : vector<1x128xf32> to vector<16x128xf32>
    %7 = arith.addf %3, %6 : vector<16x128xf32>
    %c0_5 = arith.constant 0 : index
    %c0_6 = arith.constant 0 : index
    %8 = vector.load %arg5[%c0_5, %c0_6] : memref<16x128xf32, #tpu.memory_space<vmem>>, vector<16x128xf32>
    tpu.vector_store %arg5[%c0_5, %c0_6], %7 {strides = array<i32>} : memref<16x128xf32, #tpu.memory_space<vmem>>, vector<16x128xf32>,
    return
  }
  func.func @transform_0(%arg0: i32, %arg1: i32) -> (i32, i32) {
    %c0_i32 = arith.constant 0 : i32
    %c0_i32_0 = arith.constant 0 : i32
    return %arg0, %c0_i32 : i32, i32
  }
  func.func @transform_1(%arg0: i32, %arg1: i32) -> (i32, i32) {
    %c0_i32 = arith.constant 0 : i32
    %c0_i32_0 = arith.constant 0 : i32
    return %c0_i32, %arg1 : i32, i32
  }
  func.func @transform_2(%arg0: i32, %arg1: i32) -> (i32, i32) {
    %c0_i32 = arith.constant 0 : i32
    %c0_i32_0 = arith.constant 0 : i32
    return %c0_i32, %arg1 : i32, i32
  }
  func.func @transform_3(%arg0: i32, %arg1: i32) -> (i32, i32) {
    %c0_i32 = arith.constant 0 : i32
    return %arg0, %arg1 : i32, i32
  }
}

</mosaic_0001>

<bundles_post_ra>
// kernel: multihead_forward.2
= control target key start
LH: loop header
LB: loop body
LE: loop exit
PB: predicated region body
PF: predicated region fallthrough
CT: control target
= control target key end

     0   :  { %8 = vsyncpa [#allocation3], 0  ;;  %s755_s0 = inlined_call_operand.vmem [shape: f32[32,64], index: 0, kind: input, shape index: {}]   ;;  %s756_s1 = inlined_call_operand.vmem [shape: bf16[64,128], index: 1, kind: input, shape index: {}]   ;;  %s757_s2 = inlined_call_operand.vmem [shape: bf16[1,128], index: 2, kind: input, shape index: {}]   ;;  %s758_s3 = inlined_call_operand.hbm [shape: f32[32,128], index: 3, kind: output, shape index: {}]  }
   0x1   :  { %10 = vsyncpa [#allocation3 + $0x1], 0  ;;  %s626_s12 = smov 0   ;;  %s628_s13 = smov 0  }
   0x2   :  { %s630_s14 = smov 0   ;;  %s632_s15 = smov 0  }
   0x3   :  { %s634_s16 = smov 0   ;;  %s636_s17 = smov 0  }
   0x4 LB: > { %s420_s18 = sadd.s32 4294967295, %s599_s17   ;;  %s421_s19 = sadd.s32 4294967294, %s599_s17   ;;  %s599_s17 = sphi %s636_s17, %s16_s17   ;;  %s595_s16 = sphi %s634_s16, %s765_s16   ;;  %s591_s15 = sphi %s632_s15, %s764_s15   ;;  %s587_s14 = sphi %s630_s14, %s763_s14   ;;  %s583_s13 = sphi %s628_s13, %s762_s13   ;;  %s579_s12 = sphi %s626_s12, %s761_s12  }
   0x5   : > { %s28_s20 = sadd.s32 1, %s595_s16  ;;  %s115_s21 = sadd.s32 1, %s587_s14 }
   0x6   : > { %p30_p0 = scmp.ge.s32.totalorder %s28_s20, 2  ;;  %p125_p1 = scmp.ne.s32.totalorder %s587_s14, %s583_s13 }
   0x7   : > { %p126_p2 = scmp.eq.s32.totalorder %s420_s18, 1  ;;  %p131_p3 = scmp.ne.s32.totalorder %s583_s13, %s579_s12 }
   0x8   : > { %s767_s20 = smov (%p30_p0, %s28_s20), 0  ;;  %p132_p5 = scmp.eq.s32.totalorder %s421_s19, 1 }
   0x9   : > { %p666_p4 = por %p126_p2, %p125_p1  ;;  %s110_s23 = ssub.s32 %s595_s16, %s767_s20 }
   0xa   : > { %p426_p6 = scmp.ge.s32.totalorder %s599_s17, 1  ;;  %p113_p7 = scmp.eq.s32.totalorder %s110_s23, 0 }
   0xb   : > { %p673_p8 = por %p132_p5, %p131_p3  ;;  %p172_p9 = scmp.lt.s32.totalorder %s599_s17, 3 }
   0xc   : > { %s679_s25 = scalar_select %p113_p7, %s587_s14, %s115_s21  }
   0xd   : > { %p173_p10 = pnand %p426_p6, %p172_p9 }
   0xe   : > { %v517_v0 = vld [vmem:[%s756_s1] sm:$0xff] (!%p173_p10)   ;;  %v601_v1 = vmov (!%p173_p10), 0.0   ;;  %v518_v2 = vld [vmem:[%s756_s1 + $0x8] sm:$0xff] (!%p173_p10)   ;;  %vm602_vm0 = vmmov (!%p173_p10), 0   ;;  %s428_s30 = sshll.u32 (!%p173_p10), %s591_s15, 1  ;;  %v519_v3 = vld [vmem:[%s756_s1 + $0x10] sm:$0xff] (!%p173_p10)   ;;  %v231_v8 = vlaneseq (!%p173_p10) }
   0xf   : > { %176 = sbr.rel (%p173_p10) target bundleno = 262 (0x106), region = 32  ;;  %446 = vmatprep.subr.bf16.mxu0 (!%p173_p10), %v601_v1  ;;  %454 = vmatprep.mubr.msk.bf16.mxu0 (!%p173_p10), %vm602_vm0, %v601_v1  ;;  %p204_p11 = scmp.lt.s32.totalorder (!%p173_p10), %s428_s30, 3  ;;  %v520_v4 = vld [vmem:[%s756_s1 + $0x18] sm:$0xff] (!%p173_p10)   ;;  %vm259_vm1 = vcmask (!%p173_p10), 523264   ;;  %v229_v10 = vld [vmem:[%s757_s2] sm:$0x1] (!%p173_p10) }
  0x10   : > { %447 = vmatpush3.bf16.msra.mxu0 (!%p173_p10), %v517_v0  ;;  %v232_v9 = vshrl.u32 (!%p173_p10), %v231_v8, 7  ;;  %s200_s18 = sand.u32 (!%p173_p10), 1, %s583_s13   ;;  %v230_v11 = vunpack.c.l.bf16 (!%p173_p10), %v229_v10  ;;  %s440_s28 = sshll.u32 (!%p173_p10), %s591_s15, 8 }
  0x11   : > { %448 = vmatprep.subr.bf16.mxu0 (!%p173_p10), %v601_v1  ;;  %s427_s23 = sshll.u32 (!%p173_p10), %s200_s18, 4  ;;  %s707_s4 = scalar_lea.hbm (!%p173_p10), %s758_s3, %s440_s28 }
  0x12   : > { %v233_v12 = vsub.s32 (!%p173_p10), 0, %v232_v9  ;;  %s202_s26 = scalar_lea.vmem (!%p173_p10), [#allocation2], %s427_s23  ;;  %s709_s5 = scalar_lea.sflag (!%p173_p10), [#allocation3], %s200_s18 }
  0x13   : > { %s321_s27 = sshll.u32 (!%p173_p10), %s202_s26, 4  ;;  %s702_s27 = int_to_ptr.vmem [resolvable:$true] %s321_s27 }
  0x14   : > { %449 = vmatpush3.bf16.msra.mxu0 (!%p173_p10), %v518_v2  ;;  %v234_v13 = vrot.slane (!%p173_p10), %v230_v11, %v233_v12  ;;  %s521_s15 = scalar_lea.vmem (!%p173_p10), %s702_s27, 256 }
  0x15   : > { %450 = vmatprep.subr.bf16.mxu0 (!%p173_p10), %v601_v1  ;;  %p522_p12 = scmp.ne.s32.totalorder (!%p173_p10), %s702_s27, %s521_s15 }
  0x16   : > { %s769_s30 = smov (!%p204_p11, %s428_s30), 3 }
  0x17   : > { %s429_s6 = sshll.u32 %s769_s30, 3  ;;  %p523_p13 = pnand %p522_p12, %p666_p4 }
  0x18   : > { %s207_s9 = scalar_lea.vmem %s755_s0, %s429_s6  ;;  %451 = vmatpush3.bf16.msra.mxu0 %v519_v3  ;;  %s603_s6 = smov [#allocation2]  }
  0x19   : > { %v218_v5 = vld [vmem:[%s207_s9] sm:$0xff]  ;;  %v219_v6 = vld [vmem:[%s207_s9 + $0x8] sm:$0xff]  ;;  %452 = vmatprep.subr.bf16.mxu0 %v601_v1  ;;  %p524_p0 = pneg %p523_p13  ;;  %s525_s7 = sshll.u32 %s603_s6, 4  ;;  %s526_s7 = int_to_ptr.vmem [resolvable:$false] %s525_s7 }
  0x1a   : > { %v220_v7 = vpack.c.bf16 %v219_v6, %v218_v5  ;;  %s527_s8 = scalar_lea.vmem %s526_s7, 512  ;;  %p528_p1 = scmp.lt.s32.totalorder %s702_s27, %s526_s7 }
  0x1b   : > { %p529_p2 = scmp.lt.s32.totalorder %s527_s8, %s521_s15 }
  0x1c   : > { %453 = vmatpush3.bf16.msra.mxu0 %v520_v4 }
  0x1d   : > { %p530_p3 = por %p529_p2, %p528_p1 }
  0x1f   : > { %455 = vmatmul.mubr.msk.bf16.vlgmr.msra.gmra.mrb[0].mxu0 %vm259_vm1, %v220_v7  ;;  %p531_p5 = pnand %p530_p3, %p524_p0 }
  0xf2   : > { %v297_v14 = vpop.f32.mrb[0].mxu0 }
  0xf3   : > { %v298_v15 = vadd.f32 %v297_v14, %v234_v13  ;;  %v456_v16 = vpop.f32.mrb[1].mxu0 }
  0xf4   : > { %v300_v17 = vpop.f32.mrb[2].mxu0 }
  0xf5   : > { %304 = vst [vmem:[%s202_s26] sm:$0xff] %v298_v15  ;;  %v301_v18 = vadd.f32 %v300_v17, %v234_v13  ;;  %v457_v19 = vpop.f32.mrb[3].mxu0 }
  0xf7   : > { %305 = vst [vmem:[%s202_s26 + $0x8] sm:$0xff] %v301_v18 }
  0xf8   : > { %534 = shalt.err (!%p531_p5)
}
  0xf9   : > { %s535_s9 = scalar_lea.hbm %s707_s4, 256  ;;  %s539_s18 = scalar_lea.hbm %s758_s3, 512 }
  0xfa   : > { %p536_p6 = scmp.ne.s32.totalorder %s707_s4, %s535_s9  ;;  %p540_p10 = scmp.lt.u32.totalorder %s707_s4, %s758_s3 }
  0xfb   : > { %p541_p11 = scmp.lt.u32.totalorder %s539_s18, %s535_s9  ;;  %p543_p13 = scmp.lt.u32.totalorder %s535_s9, %s707_s4 }
  0xfc   : > { %p537_p7 = pnand %p536_p6, %p666_p4 }
  0xfd   : > { %p542_p12 = por %p541_p11, %p540_p10 }
  0xfe   : > { %p538_p9 = pneg %p537_p7 }
  0xff   : > { %p544_p0 = por %p543_p13, %p542_p12 }
 0x101   : > { %p545_p1 = pnand %p544_p0, %p538_p9 }
 0x103   : > { %548 = shalt.err (!%p545_p1)
}
 0x104   : > { %s604_s23 = smov 128   ;;  %s605_s26 = smov 8  }
 0x105   : > { %458 = dma.vmem_to_hbm [thread:$0]  (%p666_p4), %s702_s27, 256, %s707_s4, %s709_s5, %s604_s23, %s604_s23, %s605_s26  }
 0x106 PF: > { %p464_p2 = scmp.ge.s32.totalorder %s599_s17, 2  ;;  %s336_s28 = sand.u32 1, %s579_s12  }
 0x107   : > { %s337_s29 = scalar_lea.sflag [#allocation3], %s336_s28 }
 0x108   : > { %p461_p3 = pnand %p464_p2, %p673_p8 }
 0x10a   : > { %574 = dma.done.wait (!%p461_p3), %s337_s29, 256  }
 0x10b   : > { %576 = vsyncadd (!%p461_p3), %s337_s29, 4294967040  ;;  %s16_s17 = sadd.s32 1, %s599_s17   ;;  %s761_s12 = smov %s583_s13 }
 0x10c   : > { %p13_p5 = scmp.ge.s32.totalorder %s16_s17, 4   ;;  %s762_s13 = smov %s587_s14 }
 0x10d   : > { %s763_s14 = smov %s679_s25  ;;  %s764_s15 = smov %s595_s16 }
 0x10e   : > { %s765_s16 = smov %s767_s20  ;;  %15 = sbr.rel (!%p13_p5) target bundleno = 4 (0x4), region = 73 }
 0x115   :  { %342 = vsyncpa [#allocation3], 1 }
 0x116   :  { %344 = vsyncpa [#allocation3 + $0x1], 1 }

// kernel: multihead_forward.3
= control target key start
LH: loop header
LB: loop body
LE: loop exit
PB: predicated region body
PF: predicated region fallthrough
CT: control target
= control target key end

     0   :  { %8 = vsyncpa [#allocation3], 0  ;;  %s859_s0 = inlined_call_operand.vmem [shape: f32[32,64], index: 0, kind: input, shape index: {}]   ;;  %s860_s1 = inlined_call_operand.hbm [shape: bf16[64,128], index: 1, kind: input, shape index: {}]   ;;  %s861_s2 = inlined_call_operand.vmem [shape: bf16[16,128], index: 2, kind: input, shape index: {}]   ;;  %s862_s3 = inlined_call_operand.hbm [shape: bf16[32,128], index: 3, kind: output, shape index: {}]  }
   0x1   :  { %9 = vsyncpa [#allocation4], 0 }
   0x2   :  { %11 = vsyncpa [#allocation4 + $0x1], 0  ;;  %s704_s12 = smov 0   ;;  %s706_s13 = smov 0  }
   0x3   :  { %s708_s14 = smov 0   ;;  %s710_s15 = smov 0  }
   0x4   :  { %s712_s16 = smov 0   ;;  %s714_s17 = smov 0  }
   0x5 LB: > { %s436_s18 = sadd.s32 4294967295, %s674_s17   ;;  %s437_s19 = sadd.s32 4294967294, %s674_s17   ;;  %s674_s17 = sphi %s714_s17, %s17_s17   ;;  %s670_s16 = sphi %s712_s16, %s880_s16   ;;  %s666_s15 = sphi %s710_s15, %s879_s15   ;;  %s662_s14 = sphi %s708_s14, %s878_s14   ;;  %s658_s13 = sphi %s706_s13, %s877_s13   ;;  %s654_s12 = sphi %s704_s12, %s876_s12  }
   0x6   : > { %s29_s20 = sadd.s32 1, %s670_s16  ;;  %s116_s21 = sadd.s32 1, %s662_s14 }
   0x7   : > { %p31_p0 = scmp.ge.s32.totalorder %s29_s20, 2  ;;  %p126_p1 = scmp.ne.s32.totalorder %s662_s14, %s658_s13 }
   0x8   : > { %p127_p2 = scmp.eq.s32.totalorder %s436_s18, 1  ;;  %p132_p3 = scmp.ne.s32.totalorder %s658_s13, %s654_s12 }
   0x9   : > { %s882_s20 = smov (%p31_p0, %s29_s20), 0  ;;  %p133_p5 = scmp.eq.s32.totalorder %s437_s19, 1 }
   0xa   : > { %p744_p4 = por %p127_p2, %p126_p1  ;;  %s111_s23 = ssub.s32 %s670_s16, %s882_s20 }
   0xb   : > { %p438_p6 = scmp.ge.s32.totalorder %s674_s17, 1  ;;  %p114_p7 = scmp.eq.s32.totalorder %s111_s23, 0 }
   0xc   : > { %s867_s22 = scalar_select %p744_p4, 1, 0 }
   0xd   : > { %p751_p8 = por %p133_p5, %p132_p3  ;;  %p140_p9 = scmp.lt.s32.totalorder %s674_s17, 3 }
   0xe   : > { %s757_s25 = scalar_select %p114_p7, %s662_s14, %s116_s21  }
   0xf   : > { %s868_s24 = scalar_select %p751_p8, 1, 0 }
  0x10   : > { %p759_p10 = pnand %p438_p6, %p140_p9  ;;  %p763_p11 = scmp.eq.s32.totalorder %s436_s18, 0 }
  0x11   : > { %s676_s28 = smov [#allocation2]   ;;  %s564_s6 = scalar_lea.hbm %s860_s1, 512 }
  0x12   : > { %s869_s26 = scalar_select %p759_p10, 1, 0 }
  0x13   : > { %s870_s27 = scalar_select %p763_p11, 1, 0 }
  0x14   : > { %p494_p12 = pneg %p759_p10  ;;  %s154_s29 = sshll.u32 %s676_s28, 4  ;;  %s155_s29 = int_to_ptr.vmem [resolvable:$true] %s154_s29 }
  0x15   : > { %p565_p0 = scmp.ne.s32.totalorder %s860_s1, %s564_s6  ;;  %p571_p5 = scmp.lt.u32.totalorder %s564_s6, %s860_s1 }
  0x16   : > { %p771_p13 = pnand %p763_p11, %p494_p12 }
  0x18   : > { %p566_p1 = pneg %p771_p13 }
  0x1a   : > { %p567_p2 = pnand %p566_p1, %p565_p0 }
  0x1c   : > { %p568_p3 = pneg %p567_p2 }
  0x1e   : > { %p573_p6 = pnand %p571_p5, %p568_p3 }
  0x20   : > { %576 = shalt.err (!%p573_p6)
}
  0x21   : > { %s577_s11 = scalar_lea.vmem %s155_s29, 512  ;;  %p585_p8 = scmp.lt.s32.totalorder %s155_s29, %s155_s29 }
  0x22   : > { %p578_p7 = scmp.ne.s32.totalorder %s155_s29, %s577_s11  ;;  %p586_p4 = scmp.lt.s32.totalorder %s577_s11, %s577_s11 }
  0x24   : > { %p580_p9 = pnand %p578_p7, %p566_p1  ;;  %p587_p11 = por %p586_p4, %p585_p8 }
  0x26   : > { %p581_p12 = pneg %p580_p9 }
  0x28   : > { %p588_p10 = pnand %p587_p11, %p581_p12 }
  0x2a   : > { %591 = shalt.err (!%p588_p10)
}
  0x2b   : > { %s677_s18 = smov 64   ;;  %s678_s19 = smov 4  }
  0x2c   : > { %497 = dma.hbm_to_vmem [thread:$0]  (!%p771_p13), %s860_s1, 512, %s155_s29, [#allocation3], %s677_s18, %s677_s18, %s678_s19  }
  0x2d   : > { %p872_p0 = scmp.ne.s32.totalorder %s869_s26, 0 }
  0x2e   : > { %p873_p2 = scmp.ne.s32.totalorder (!%p872_p0), %s870_s27, 0 }
  0x2f   : > { %186 = sbr.rel (%p872_p0) target bundleno = 305 (0x131), region = 32 }
  0x36   : > { %645 = dma.done.wait (%p873_p2), [#allocation3], 512  }
  0x37   : > { %647 = vsyncadd (%p873_p2), [#allocation3], 4294966784  ;;  %s445_s28 = sshll.u32 %s666_s15, 1  ;;  %v679_v0 = vmov 0.0   ;;  %vm680_vm0 = vmmov 0   ;;  %v560_v1 = vld [vmem:[#allocation2] sm:$0xff]  }
  0x38   : > { %476 = vmatprep.subr.bf16.mxu0 %v679_v0  ;;  %484 = vmatprep.mubr.msk.bf16.mxu0 %vm680_vm0, %v679_v0  ;;  %p215_p4 = scmp.lt.s32.totalorder %s445_s28, 3  ;;  %v561_v2 = vld [vmem:[#allocation2 + $0x8] sm:$0xff]   ;;  %v562_v3 = vld [vmem:[#allocation2 + $0x10] sm:$0xff]   ;;  %v563_v4 = vld [vmem:[#allocation2 + $0x18] sm:$0xff]   ;;  %vm265_vm1 = vcmask 523264   ;;  %s211_s4 = sand.u32 1, %s658_s13  }
  0x39   : > { %477 = vmatpush3.bf16.msra.mxu0 %v560_v1  ;;  %s444_s5 = sshll.u32 %s211_s4, 3  ;;  %v463_v8 = vld [vmem:[%s861_s2] sm:$0xff]   ;;  %s461_s10 = sshll.u32 %s666_s15, 7 }
  0x3a   : > { %s884_s28 = smov (!%p215_p4, %s445_s28), 3  ;;  %478 = vmatprep.subr.bf16.mxu0 %v679_v0  ;;  %v464_v9 = vunpack.c.l.bf16 %v463_v8  ;;  %v465_v10 = vunpack.c.h.bf16 %v463_v8  ;;  %s213_s8 = scalar_lea.vmem [#allocation5], %s444_s5 }
  0x3b   : > { %s446_s26 = sshll.u32 %s884_s28, 3  ;;  %s335_s9 = sshll.u32 %s213_s8, 4  ;;  %s806_s9 = int_to_ptr.vmem [resolvable:$true] %s335_s9 }
  0x3c   : > { %s218_s30 = scalar_lea.vmem %s859_s0, %s446_s26  ;;  %s811_s19 = scalar_lea.hbm %s862_s3, %s461_s10 }
  0x3d   : > { %479 = vmatpush3.bf16.msra.mxu0 %v561_v2  ;;  %v226_v5 = vld [vmem:[%s218_s30] sm:$0xff]  ;;  %v227_v6 = vld [vmem:[%s218_s30 + $0x8] sm:$0xff]  ;;  %s813_s21 = scalar_lea.sflag [#allocation4], %s211_s4  ;;  %s592_s23 = scalar_lea.vmem %s806_s9, 128 }
  0x3e   : > { %480 = vmatprep.subr.bf16.mxu0 %v679_v0  ;;  %v228_v7 = vpack.c.bf16 %v227_v6, %v226_v5  ;;  %p593_p8 = scmp.ne.s32.totalorder %s806_s9, %s592_s23  ;;  %p874_p10 = scmp.ne.s32.totalorder %s867_s22, 0 }
  0x3f   : > { %s681_s15 = smov [#allocation5]  }
  0x40   : > { %p594_p11 = pnand %p593_p8, %p874_p10  ;;  %s596_s28 = sshll.u32 %s681_s15, 4  ;;  %s597_s28 = int_to_ptr.vmem [resolvable:$false] %s596_s28 }
  0x41   : > { %481 = vmatpush3.bf16.msra.mxu0 %v562_v3  ;;  %s598_s26 = scalar_lea.vmem %s597_s28, 256  ;;  %p599_p1 = scmp.lt.s32.totalorder %s806_s9, %s597_s28 }
  0x42   : > { %482 = vmatprep.subr.bf16.mxu0 %v679_v0  ;;  %p595_p13 = pneg %p594_p11  ;;  %p600_p3 = scmp.lt.s32.totalorder %s598_s26, %s592_s23 }
  0x44   : > { %p601_p5 = por %p600_p3, %p599_p1 }
  0x45   : > { %483 = vmatpush3.bf16.msra.mxu0 %v563_v4 }
  0x46   : > { %p602_p6 = pnand %p601_p5, %p595_p13 }
  0x48   : > { %485 = vmatmul.mubr.msk.bf16.vlgmr.msra.gmra.mrb[0].mxu0 %vm265_vm1, %v228_v7 }
 0x11b   : > { %v303_v11 = vpop.f32.mrb[0].mxu0 }
 0x11c   : > { %v486_v12 = vpop.f32.mrb[1].mxu0  ;;  %v304_v14 = vadd.f32 %v464_v9, %v303_v11 }
 0x11d   : > { %v306_v13 = vpop.f32.mrb[2].mxu0 }
 0x11e   : > { %v307_v15 = vadd.f32 %v465_v10, %v306_v13  ;;  %v487_v16 = vpop.f32.mrb[3].mxu0 }
 0x120   : > { %v469_v17 = vpack.c.bf16 %v307_v15, %v304_v14 }
 0x122   : > { %470 = vst [vmem:[%s213_s8] sm:$0xff] %v469_v17  }
 0x123   : > { %605 = shalt.err (!%p602_p6)
}
 0x124   : > { %s606_s29 = scalar_lea.hbm %s811_s19, 128  ;;  %s610_s4 = scalar_lea.hbm %s862_s3, 256 }
 0x125   : > { %p607_p7 = scmp.ne.s32.totalorder %s811_s19, %s606_s29  ;;  %p611_p0 = scmp.lt.u32.totalorder %s811_s19, %s862_s3 }
 0x126   : > { %p612_p2 = scmp.lt.u32.totalorder %s610_s4, %s606_s29  ;;  %p614_p8 = scmp.lt.u32.totalorder %s606_s29, %s811_s19 }
 0x127   : > { %p608_p9 = pnand %p607_p7, %p874_p10 }
 0x128   : > { %p613_p4 = por %p612_p2, %p611_p0 }
 0x129   : > { %p609_p12 = pneg %p608_p9 }
 0x12a   : > { %p615_p11 = por %p614_p8, %p613_p4 }
 0x12c   : > { %p616_p13 = pnand %p615_p11, %p609_p12 }
 0x12e   : > { %619 = shalt.err (!%p616_p13)
}
 0x12f   : > { %s682_s7 = smov 64   ;;  %s683_s8 = smov 4  }
 0x130   : > { %492 = dma.vmem_to_hbm [thread:$0]  (%p874_p10), %s806_s9, 128, %s811_s19, %s813_s21, %s682_s7, %s682_s7, %s683_s8  }
 0x131 PF: > { %p504_p1 = scmp.ge.s32.totalorder %s674_s17, 2  ;;  %s350_s10 = sand.u32 1, %s654_s12  }
 0x132   : > { %p875_p3 = scmp.ne.s32.totalorder %s868_s24, 0  ;;  %s351_s11 = scalar_lea.sflag [#allocation4], %s350_s10 }
 0x134   : > { %p499_p5 = pnand %p504_p1, %p875_p3 }
 0x136   : > { %649 = dma.done.wait (!%p499_p5), %s351_s11, 128  }
 0x137   : > { %651 = vsyncadd (!%p499_p5), %s351_s11, 4294967168  ;;  %s17_s17 = sadd.s32 1, %s674_s17   ;;  %s876_s12 = smov %s658_s13 }
 0x138   : > { %p14_p6 = scmp.ge.s32.totalorder %s17_s17, 4   ;;  %s877_s13 = smov %s662_s14 }
 0x139   : > { %s878_s14 = smov %s757_s25  ;;  %s879_s15 = smov %s670_s16 }
 0x13a   : > { %s880_s16 = smov %s882_s20  ;;  %16 = sbr.rel (!%p14_p6) target bundleno = 5 (0x5), region = 76 }
 0x141   :  { %356 = vsyncpa [#allocation3], 1 }
 0x142   :  { %358 = vsyncpa [#allocation3 + $0x1], 1 }
 0x143   :  { %359 = vsyncpa [#allocation4], 1 }
 0x144   :  { %361 = vsyncpa [#allocation4 + $0x1], 1 }

</bundles_post_ra>
